<compile_context>
chip_gen: v7x
topology: tpu7x:2x2x1
jax: 0.10.0
libtpu: 0.0.40
codegen_flags: <defaults>
</compile_context>

<pallas_src>
import functools

import jax
import jax.numpy as jnp
from jax.experimental import pallas as pl
from jax.experimental.pallas import tpu as pltpu


def _round_up(x, m):
    return ((x + m - 1) // m) * m


# ----------------------------------------------------------------------------
# Fold BatchNorm1d (running stats) into the preceding Linear:  y = x @ W' + b'
#   W' = W * s,  b' = b * s + t,   s = gamma / sqrt(var + eps),  t = beta - mean*s
# Weights are cast to bf16 (matmul operands); biases stay f32.
# ----------------------------------------------------------------------------
def fold_bn_params(params, eps=1e-5):
    folded = []
    for (w, b, gamma, beta, mean, var) in params:
        s = gamma / jnp.sqrt(var + eps)
        t = beta - mean * s
        w_f = (w * s[None, :]).astype(jnp.bfloat16)
        b_f = (b * s + t).astype(jnp.float32)
        folded.append((w_f, b_f))
    return folded


# ----------------------------------------------------------------------------
# Pallas kernel: full MLP stack (unrolled at trace time) for one batch tile.
#   refs = [w0_x, w1, b1, ..., w_{L-1}, b_{L-1}, out_ref]
#   aux_ref carries the per-row layer-0 bias (aux stream + b0, BN-folded, f32).
# ----------------------------------------------------------------------------
def _lsi_encoder_kernel(num_layers, num_topics, x_ref, auxb_ref, *refs):
    out_ref = refs[-1]
    param_refs = refs[:-1]

    # Layer 0: in-kernel bf16 cast of X (f32 stays in HBM only once), MXU dot
    # with f32 accumulation, per-row aux bias already includes b0.
    h = (
        jnp.dot(x_ref[...].astype(jnp.bfloat16), param_refs[0][...],
                preferred_element_type=jnp.float32)
        + auxb_ref[...]
    )
    if num_layers > 1:
        h = jnp.maximum(h, 0.0)  # ReLU (Dropout is identity in eval mode)

    idx = 1
    for l in range(1, num_layers):
        w = param_refs[idx][...]
        b = param_refs[idx + 1][...]
        idx += 2
        # bf16 operands, f32 accumulation; bias/ReLU in f32.
        h = jnp.dot(h.astype(w.dtype), w, preferred_element_type=jnp.float32) + b
        if l < num_layers - 1:
            h = jnp.maximum(h, 0.0)

    # Packed, lane-dense output slab (width padded to a multiple of 128):
    #   cols [0, num_topics)              -> theta_loc (raw)
    #   cols [num_topics, 2*num_topics)   -> softplus(theta_scale logits)
    #   remaining padded cols             -> don't-care
    # Stable single-exp softplus (one exp + one log1p per element), iota-mask
    # select (pure VPU), one contiguous unmasked 128-wide store.
    cols = jax.lax.broadcasted_iota(jnp.int32, h.shape, 1)
    is_scale = jnp.logical_and(cols >= num_topics, cols < 2 * num_topics)
    sp = jnp.maximum(h, 0.0) + jnp.log1p(jnp.exp(-jnp.abs(h)))
    out_ref[...] = jnp.where(is_scale, sp, h)


# ----------------------------------------------------------------------------
# Wrapper: param folding / padding in plain JAX, MLP hot path in the kernel.
# ----------------------------------------------------------------------------
def lsi_encoder_forward(X, read_depth, covariates, extra_features, params, *,
                        num_topics, max_batch_tile=512):
    N, lsi_dim = X.shape
    num_layers = len(params)

    folded = fold_bn_params(params)

    # Pad the final layer to a lane-dense (128-multiple) output width.
    OUT_PAD = _round_up(2 * num_topics, 128)
    w_last, b_last = folded[-1]
    folded[-1] = (
        jnp.pad(w_last, ((0, 0), (0, OUT_PAD - w_last.shape[1]))),
        jnp.pad(b_last, ((0, OUT_PAD - b_last.shape[0]),)),
    )

    # Aux stream folded in plain JAX into a per-row f32 bias for layer 0
    # (absorbs b0 as well).  Tiny [N, hidden] array; removes the K=8 in-kernel
    # matmul and one DMA stream per grid step.
    aux = jnp.concatenate(
        [jnp.log(read_depth), covariates, extra_features], axis=1
    ).astype(jnp.float32)
    w0, b0 = folded[0]
    w0_x = w0[:lsi_dim]                                     # bf16, MXU operand
    aux_bias = aux @ w0[lsi_dim:].astype(jnp.float32) + b0  # [N, emb] f32

    # Batch tiling: large tiles (per-step overhead ~0.35us; bigger tiles hit a
    # larger fraction of HBM roofline), multiple of 16 sublanes (bf16 packing),
    # but keep >= 2 grid steps when N allows so both v7x TCs get work.
    batch_tile = max(16, min(max_batch_tile, _round_up(pl.cdiv(N, 2), 16)))
    num_tiles = pl.cdiv(N, batch_tile)
    N_pad = num_tiles * batch_tile

    if N_pad != N:
        # Only pad when the batch is not a tile multiple (no dtype cast, X stays
        # in its native f32 layout either way).
        x_in = jnp.pad(X, ((0, N_pad - N), (0, 0)))
        auxb_in = jnp.pad(aux_bias, ((0, N_pad - N), (0, 0)))
    else:
        x_in = X
        auxb_in = aux_bias

    kernel_params = [w0_x]
    for l in range(1, num_layers):
        w, b = folded[l]
        kernel_params += [w, b.reshape(1, -1)]

    in_specs = [
        pl.BlockSpec((batch_tile, lsi_dim), lambda i: (i, 0)),
        pl.BlockSpec((batch_tile, auxb_in.shape[1]), lambda i: (i, 0)),
    ]
    for arr in kernel_params:
        in_specs.append(pl.BlockSpec(arr.shape, lambda i: (0, 0)))  # replicated

    out_specs = pl.BlockSpec((batch_tile, OUT_PAD), lambda i: (i, 0))
    out_shape = jax.ShapeDtypeStruct((N_pad, OUT_PAD), jnp.float32)

    kernel = functools.partial(_lsi_encoder_kernel, num_layers, num_topics)

    packed = pl.pallas_call(
        kernel,
        grid=(num_tiles,),
        in_specs=in_specs,
        out_specs=out_specs,
        out_shape=out_shape,
        compiler_params=pltpu.CompilerParams(
            dimension_semantics=("parallel",),
            vmem_limit_bytes=32 * 1024 * 1024,
        ),
    )(x_in, auxb_in, *kernel_params)

    # Single slice of the small head, then split in registers.
    head = packed[:N, :2 * num_topics]
    theta_loc = head[:, :num_topics]
    theta_scale = head[:, num_topics:]
    return theta_loc, theta_scale


# ----------------------------------------------------------------------------
# Pure-JAX reference using the same folded/bf16-rounded operands, so the only
# divergence from the kernel is MXU accumulation order / softplus formulation.
# NOTE: deviation from the true f32 PyTorch LSIEncoder will be larger (~1e-2);
# acceptable for inference.
# ----------------------------------------------------------------------------
def lsi_encoder_reference(X, read_depth, covariates, extra_features, params, *,
                          num_topics):
    N, lsi_dim = X.shape
    folded = fold_bn_params(params)
    L = len(folded)
    aux = jnp.concatenate(
        [jnp.log(read_depth), covariates, extra_features], axis=1
    ).astype(jnp.float32)
    w0, b0 = folded[0]
    h = (jnp.dot(X.astype(jnp.bfloat16), w0[:lsi_dim],
                 preferred_element_type=jnp.float32)
         + aux @ w0[lsi_dim:].astype(jnp.float32) + b0)
    if L > 1:
        h = jnp.maximum(h, 0.0)
    for l in range(1, L):
        w, b = folded[l]
        h = jnp.dot(h.astype(jnp.bfloat16), w, preferred_element_type=jnp.float32) + b
        if l < L - 1:
            h = jnp.maximum(h, 0.0)
    theta_loc = h[:, :num_topics]
    theta_scale = jax.nn.softplus(h[:, num_topics:2 * num_topics])
    return theta_loc, theta_scale


# ----------------------------------------------------------------------------
# Deterministic parameter construction (synthetic, no checkpoint).
# ----------------------------------------------------------------------------
def make_params(key, layer_dims):
    params = []
    for l, (d_i, d_o) in enumerate(zip(layer_dims[:-1], layer_dims[1:])):
        k = jax.random.fold_in(key, l)
        kw, kb, kg, kbe, km, kv = jax.random.split(k, 6)
        w = jax.random.normal(kw, (d_i, d_o), jnp.float32) * (1.0 / jnp.sqrt(d_i))
        b = jax.random.normal(kb, (d_o,), jnp.float32) * 0.05
        gamma = 1.0 + 0.1 * jax.random.normal(kg, (d_o,), jnp.float32)
        beta = 0.05 * jax.random.normal(kbe, (d_o,), jnp.float32)
        mean = 0.1 * jax.random.normal(km, (d_o,), jnp.float32)
        var = 1.0 + 0.1 * jax.random.uniform(kv, (d_o,), jnp.float32)
        params.append((w, b, gamma, beta, mean, var))
    return params


if __name__ == "__main__":
    # Module hyper-parameters (small, consistent with LSIEncoder.__init__).
    num_topics = 8
    num_covariates = 2
    num_extra_features = 3
    hidden = 32
    embedding_size = hidden          # embedding_size=None -> hidden
    num_layers = 3
    # embedding_dropout is unused by LSIEncoder.forward; dropout is identity in eval.

    lsi_dim = max(128, 3 * num_topics)                  # input "X" feature width
    in_dim = lsi_dim + 1 + num_covariates + num_extra_features
    output_batchnorm_size = 2 * num_topics
    layer_dims = [in_dim, embedding_size] + [hidden] * (num_layers - 2) + \
                 [output_batchnorm_size]

    batch = 256            # -> batch_tile=128, 2 parallel grid steps
    key = jax.random.PRNGKey(0)
    kx, kr, kc, ke, kp = jax.random.split(key, 5)

    X = jax.random.normal(kx, (batch, lsi_dim), jnp.float32)
    read_depth = jax.random.uniform(kr, (batch, 1), jnp.float32,
                                    minval=1.0, maxval=1000.0)
    covariates = jax.random.normal(kc, (batch, num_covariates), jnp.float32)
    extra_features = jax.random.normal(ke, (batch, num_extra_features), jnp.float32)

    params = make_params(kp, layer_dims)

    theta_loc, theta_scale = lsi_encoder_forward(
        X, read_depth, covariates, extra_features, params,
        num_topics=num_topics,
    )
    jax.block_until_ready((theta_loc, theta_scale))

    ref_loc, ref_scale = lsi_encoder_reference(
        X, read_depth, covariates, extra_features, params, num_topics=num_topics
    )

    assert theta_loc.shape == (batch, num_topics)
    assert theta_scale.shape == (batch, num_topics)
    # Kernel and reference use identical bf16-rounded operands with f32
    # accumulation; only summation order / softplus formulation differ.
    assert jnp.allclose(theta_loc, ref_loc, atol=1e-3, rtol=1e-3)
    assert jnp.allclose(theta_scale, ref_scale, atol=1e-3, rtol=1e-3)

    print("KERNEL_OK")
</pallas_src>

<mosaic_0001>
module attributes {stable_mosaic.version = 11 : i64} {
  func.func @_lsi_encoder_kernel(%arg0: i32, %arg1: memref<128x128xf32, #tpu.memory_space<vmem>>, %arg2: memref<128x32xf32, #tpu.memory_space<vmem>>, %arg3: memref<128x32xbf16, #tpu.memory_space<vmem>>, %arg4: memref<32x32xbf16, #tpu.memory_space<vmem>>, %arg5: memref<1x32xf32, #tpu.memory_space<vmem>>, %arg6: memref<32x128xbf16, #tpu.memory_space<vmem>>, %arg7: memref<1x128xf32, #tpu.memory_space<vmem>>, %arg8: memref<128x128xf32, #tpu.memory_space<vmem>>) attributes {dimension_semantics = [#tpu.dimension_semantics<parallel>], iteration_bounds = array<i64: 2>, scalar_prefetch = 0 : i64, scratch_operands = 0 : i64, tpu.core_type = #tpu.core_type<tc>, window_params = [{transform_indices = @transform_0, window_bounds = array<i64: 128, 128>}, {transform_indices = @transform_1, window_bounds = array<i64: 128, 32>}, {pipeline_mode = #tpu.pipeline_mode<synchronous>, transform_indices = @transform_2, window_bounds = array<i64: 128, 32>}, {pipeline_mode = #tpu.pipeline_mode<synchronous>, transform_indices = @transform_3, window_bounds = array<i64: 32, 32>}, {pipeline_mode = #tpu.pipeline_mode<synchronous>, transform_indices = @transform_4, window_bounds = array<i64: 1, 32>}, {pipeline_mode = #tpu.pipeline_mode<synchronous>, transform_indices = @transform_5, window_bounds = array<i64: 32, 128>}, {pipeline_mode = #tpu.pipeline_mode<synchronous>, transform_indices = @transform_6, window_bounds = array<i64: 1, 128>}, {transform_indices = @transform_7, window_bounds = array<i64: 128, 128>}]} {
    %c0 = arith.constant 0 : index
    %c0_0 = arith.constant 0 : index
    %0 = vector.load %arg1[%c0, %c0_0] : memref<128x128xf32, #tpu.memory_space<vmem>>, vector<128x128xf32>
    %1 = arith.truncf %0 : vector<128x128xf32> to vector<128x128xbf16>
    %c0_1 = arith.constant 0 : index
    %c0_2 = arith.constant 0 : index
    %2 = vector.load %arg3[%c0_1, %c0_2] : memref<128x32xbf16, #tpu.memory_space<vmem>>, vector<128x32xbf16>
    %cst = arith.constant dense<0.000000e+00> : vector<128x32xf32>
    %3 = tpu.matmul %1, %2, %cst {dimension_numbers = #tpu.dot_dimension_numbers<[1], [0], [0], [1], [0, 0, 1, 1], [], []>} : vector<128x128xbf16>, vector<128x32xbf16>, vector<128x32xf32> -> vector<128x32xf32>
    %c0_3 = arith.constant 0 : index
    %c0_4 = arith.constant 0 : index
    %4 = vector.load %arg2[%c0_3, %c0_4] : memref<128x32xf32, #tpu.memory_space<vmem>>, vector<128x32xf32>
    %5 = arith.addf %3, %4 : vector<128x32xf32>
    %cst_5 = arith.constant 0.000000e+00 : f32
    %6 = vector.broadcast %cst_5 : f32 to vector<128x32xf32>
    %7 = arith.maximumf %5, %6 : vector<128x32xf32>
    %c0_6 = arith.constant 0 : index
    %c0_7 = arith.constant 0 : index
    %8 = vector.load %arg4[%c0_6, %c0_7] : memref<32x32xbf16, #tpu.memory_space<vmem>>, vector<32x32xbf16>
    %c0_8 = arith.constant 0 : index
    %c0_9 = arith.constant 0 : index
    %9 = vector.load %arg5[%c0_8, %c0_9] : memref<1x32xf32, #tpu.memory_space<vmem>>, vector<1x32xf32>
    %10 = arith.truncf %7 : vector<128x32xf32> to vector<128x32xbf16>
    %cst_10 = arith.constant dense<0.000000e+00> : vector<128x32xf32>
    %11 = tpu.matmul %10, %8, %cst_10 {dimension_numbers = #tpu.dot_dimension_numbers<[1], [0], [0], [1], [0, 0, 1, 1], [], []>} : vector<128x32xbf16>, vector<32x32xbf16>, vector<128x32xf32> -> vector<128x32xf32>
    %12 = vector.broadcast %9 : vector<1x32xf32> to vector<128x32xf32>
    %13 = arith.addf %11, %12 : vector<128x32xf32>
    %cst_11 = arith.constant 0.000000e+00 : f32
    %14 = vector.broadcast %cst_11 : f32 to vector<128x32xf32>
    %15 = arith.maximumf %13, %14 : vector<128x32xf32>
    %c0_12 = arith.constant 0 : index
    %c0_13 = arith.constant 0 : index
    %16 = vector.load %arg6[%c0_12, %c0_13] : memref<32x128xbf16, #tpu.memory_space<vmem>>, vector<32x128xbf16>
    %c0_14 = arith.constant 0 : index
    %c0_15 = arith.constant 0 : index
    %17 = vector.load %arg7[%c0_14, %c0_15] : memref<1x128xf32, #tpu.memory_space<vmem>>, vector<1x128xf32>
    %18 = arith.truncf %15 : vector<128x32xf32> to vector<128x32xbf16>
    %cst_16 = arith.constant dense<0.000000e+00> : vector<128x128xf32>
    %19 = tpu.matmul %18, %16, %cst_16 {dimension_numbers = #tpu.dot_dimension_numbers<[1], [0], [0], [1], [0, 0, 1, 1], [], []>} : vector<128x32xbf16>, vector<32x128xbf16>, vector<128x128xf32> -> vector<128x128xf32>
    %20 = vector.broadcast %17 : vector<1x128xf32> to vector<128x128xf32>
    %21 = arith.addf %19, %20 : vector<128x128xf32>
    %22 = tpu.iota {dimensions = array<i32: 1>} : vector<128x128xi32>
    %c8_i32 = arith.constant 8 : i32
    %23 = vector.broadcast %c8_i32 : i32 to vector<128x128xi32>
    %24 = arith.cmpi sge, %22, %23 : vector<128x128xi32>
    %c16_i32 = arith.constant 16 : i32
    %25 = vector.broadcast %c16_i32 : i32 to vector<128x128xi32>
    %26 = arith.cmpi slt, %22, %25 : vector<128x128xi32>
    %27 = arith.andi %24, %26 : vector<128x128xi1>
    %cst_17 = arith.constant 0.000000e+00 : f32
    %28 = vector.broadcast %cst_17 : f32 to vector<128x128xf32>
    %29 = arith.maximumf %21, %28 : vector<128x128xf32>
    %30 = math.absf %21 : vector<128x128xf32>
    %cst_18 = arith.constant 0.000000e+00 : f32
    %31 = vector.broadcast %cst_18 : f32 to vector<128x128xf32>
    %32 = arith.subf %31, %30 : vector<128x128xf32>
    %33 = math.exp %32 : vector<128x128xf32>
    %34 = math.log1p %33 : vector<128x128xf32>
    %35 = arith.addf %29, %34 : vector<128x128xf32>
    %36 = arith.select %27, %35, %21 : vector<128x128xi1>, vector<128x128xf32>
    %c0_19 = arith.constant 0 : index
    %c0_20 = arith.constant 0 : index
    %37 = vector.load %arg8[%c0_19, %c0_20] : memref<128x128xf32, #tpu.memory_space<vmem>>, vector<128x128xf32>
    tpu.vector_store %arg8[%c0_19, %c0_20], %36 {strides = array<i32>} : memref<128x128xf32, #tpu.memory_space<vmem>>, vector<128x128xf32>,
    return
  }
  func.func @transform_0(%arg0: i32) -> (i32, i32) {
    %c0_i32 = arith.constant 0 : i32
    %c0_i32_0 = arith.constant 0 : i32
    return %arg0, %c0_i32 : i32, i32
  }
  func.func @transform_1(%arg0: i32) -> (i32, i32) {
    %c0_i32 = arith.constant 0 : i32
    %c0_i32_0 = arith.constant 0 : i32
    return %arg0, %c0_i32 : i32, i32
  }
  func.func @transform_2(%arg0: i32) -> (i32, i32) {
    %c0_i32 = arith.constant 0 : i32
    %c0_i32_0 = arith.constant 0 : i32
    %c0_i32_1 = arith.constant 0 : i32
    return %c0_i32, %c0_i32_0 : i32, i32
  }
  func.func @transform_3(%arg0: i32) -> (i32, i32) {
    %c0_i32 = arith.constant 0 : i32
    %c0_i32_0 = arith.constant 0 : i32
    %c0_i32_1 = arith.constant 0 : i32
    return %c0_i32, %c0_i32_0 : i32, i32
  }
  func.func @transform_4(%arg0: i32) -> (i32, i32) {
    %c0_i32 = arith.constant 0 : i32
    %c0_i32_0 = arith.constant 0 : i32
    %c0_i32_1 = arith.constant 0 : i32
    return %c0_i32, %c0_i32_0 : i32, i32
  }
  func.func @transform_5(%arg0: i32) -> (i32, i32) {
    %c0_i32 = arith.constant 0 : i32
    %c0_i32_0 = arith.constant 0 : i32
    %c0_i32_1 = arith.constant 0 : i32
    return %c0_i32, %c0_i32_0 : i32, i32
  }
  func.func @transform_6(%arg0: i32) -> (i32, i32) {
    %c0_i32 = arith.constant 0 : i32
    %c0_i32_0 = arith.constant 0 : i32
    %c0_i32_1 = arith.constant 0 : i32
    return %c0_i32, %c0_i32_0 : i32, i32
  }
  func.func @transform_7(%arg0: i32) -> (i32, i32) {
    %c0_i32 = arith.constant 0 : i32
    %c0_i32_0 = arith.constant 0 : i32
    return %arg0, %c0_i32 : i32, i32
  }
}

</mosaic_0001>

<bundles_post_ra>
// kernel: tpu_custom_call.1
= control target key start
LH: loop header
LB: loop body
LE: loop exit
PB: predicated region body
PF: predicated region fallthrough
CT: control target
= control target key end

     0   :  { %12 = vsyncpa [#allocation3], 0  ;;  %s2063_s0 = inlined_call_operand.vmem [shape: f32[256,128], index: 0, kind: input, shape index: {}]   ;;  %s2064_s1 = inlined_call_operand.vmem [shape: f32[256,32], index: 1, kind: input, shape index: {}]   ;;  %s2065_s2 = inlined_call_operand.vmem [shape: bf16[128,32], index: 2, kind: input, shape index: {}]   ;;  %s2066_s3 = inlined_call_operand.vmem [shape: bf16[32,32], index: 3, kind: input, shape index: {}]   ;;  %s2067_s4 = inlined_call_operand.vmem [shape: f32[1,32], index: 4, kind: input, shape index: {}]   ;;  %s2068_s5 = inlined_call_operand.vmem [shape: bf16[32,128], index: 5, kind: input, shape index: {}]   ;;  %s2069_s6 = inlined_call_operand.vmem [shape: f32[1,128], index: 6, kind: input, shape index: {}]   ;;  %s2070_s7 = inlined_call_operand.hbm [shape: f32[256,128], index: 7, kind: output, shape index: {}]  }
   0x1   :  { %14 = vsyncpa [#allocation3 + $0x1], 0  ;;  %s1583_s24 = smov 0   ;;  %s1585_s25 = smov 0  }
   0x2   :  { %s1587_s26 = smov 0   ;;  %s1589_s27 = smov 0  }
   0x3 LB: > { %s1604_s28 = sadd.s32 4294967295, %s1538_s27   ;;  %s1206_s29 = sadd.s32 4294967294, %s1538_s27   ;;  %s1538_s27 = sphi %s1589_s27, %s2094_s27   ;;  %s1534_s26 = sphi %s1587_s26, %s2093_s26   ;;  %s1530_s25 = sphi %s1585_s25, %s2092_s25   ;;  %s1526_s24 = sphi %s1583_s24, %s2091_s24  }
   0x4   : > { %s1608_s30 = sadd.s32 1, %s1538_s27   ;;  %s184_s8 = sadd.s32 1, %s1534_s26 }
   0x5   : > { %s181_s9 = ssub.s32 %s1538_s27, %s1608_s30  ;;  %p194_p0 = scmp.ne.s32.totalorder %s1534_s26, %s1530_s25 }
   0x6   : > { %p182_p1 = scmp.eq.s32.totalorder %s181_s9, 0  ;;  %p195_p2 = scmp.eq.s32.totalorder %s1604_s28, 1 }
   0x7   : > { %p200_p3 = scmp.ne.s32.totalorder %s1530_s25, %s1526_s24  ;;  %p201_p4 = scmp.eq.s32.totalorder %s1206_s29, 1 }
   0x8   : > { %s1619_s10 = scalar_select %p182_p1, %s1534_s26, %s184_s8  }
   0x9   : > { %p1621_p5 = por %p195_p2, %p194_p0  ;;  %p1625_p6 = por %p201_p4, %p200_p3 }
   0xa   : > { %p1209_p7 = scmp.ge.s32.totalorder %s1538_s27, 1  ;;  %p252_p8 = scmp.lt.s32.totalorder %s1538_s27, 3 }
   0xc   : > { %p253_p9 = pnand %p1209_p7, %p252_p8 }
   0xd   : > { %v1400_v0 = vld [vmem:[%s2065_s2] sm:$0xff] (!%p253_p9)   ;;  %s1211_s15 = sshll.u32 (!%p253_p9), %s1604_s28, 4  ;;  %v1401_v1 = vld [vmem:[%s2065_s2 + $0x8] sm:$0xff] (!%p253_p9)   ;;  %v1402_v2 = vld [vmem:[%s2065_s2 + $0x10] sm:$0xff] (!%p253_p9)   ;;  %vm551_vm0 = vcmask (!%p253_p9), 261120   ;;  %s286_s29 = sand.u32 (!%p253_p9), 1, %s1530_s25  }
   0xe   : > { %256 = sbr.rel (%p253_p9) target bundleno = 805 (0x325), region = 48  ;;  %p290_p10 = scmp.lt.s32.totalorder (!%p253_p9), %s1211_s15, 31  ;;  %1287 = vmatprep.subr.bf16.mxu0 (!%p253_p9), %v1400_v0  ;;  %v1403_v3 = vld [vmem:[%s2065_s2 + $0x18] sm:$0xff] (!%p253_p9)   ;;  %v1404_v7 = vld [vmem:[%s2065_s2 + $0x20] sm:$0xff] (!%p253_p9)   ;;  %v1405_v8 = vld [vmem:[%s2065_s2 + $0x28] sm:$0xff] (!%p253_p9)  }
   0xf   : > { %1288 = vmatpush3.bf16.msra.mxu0 (!%p253_p9), %v1400_v0  ;;  %v1406_v9 = vld [vmem:[%s2065_s2 + $0x30] sm:$0xff] (!%p253_p9)   ;;  %v1407_v10 = vld [vmem:[%s2065_s2 + $0x38] sm:$0xff] (!%p253_p9)   ;;  %v1408_v32 = vld [vmem:[%s2066_s3] sm:$0xff] (!%p253_p9)   ;;  %s1210_s8 = sshll.u32 (!%p253_p9), %s286_s29, 7  ;;  %s1250_s13 = sshll.u32 (!%p253_p9), %s1604_s28, 11 }
  0x10   : > { %1289 = vmatprep.subr.bf16.mxu0 (!%p253_p9), %v1401_v1  ;;  %1319 = vmatprep.subr.bf16.mxu1 (!%p253_p9), %v1408_v32  ;;  %v1409_v33 = vld [vmem:[%s2066_s3 + $0x8] sm:$0xff] (!%p253_p9)   ;;  %v1410_v34 = vld [vmem:[%s2068_s5] sm:$0xff] (!%p253_p9)   ;;  %s1868_s9 = scalar_lea.vmem (!%p253_p9), [#allocation2], %s1210_s8  ;;  %s2022_s28 = scalar_lea.sflag (!%p253_p9), [#allocation3], %s286_s29 }
  0x11   : > { %1320 = vmatpush3.bf16.msra.mxu1 (!%p253_p9), %v1408_v32  ;;  %v1411_v60 = vld [vmem:[%s2068_s5 + $0x8] sm:$0xff] (!%p253_p9)   ;;  %s1132_s14 = sshll.u32 (!%p253_p9), %s1868_s9, 4  ;;  %s2013_s14 = int_to_ptr.vmem [resolvable:$true] %s1132_s14 }
  0x12   : > { %1321 = vmatprep.subr.bf16.mxu1 (!%p253_p9), %v1409_v33 }
  0x13   : > { %1290 = vmatpush3.bf16.msra.mxu0 (!%p253_p9), %v1401_v1 }
  0x14   : > { %1291 = vmatprep.subr.bf16.mxu0 (!%p253_p9), %v1402_v2 }
  0x15   : > { %s2096_s15 = smov (!%p290_p10, %s1211_s15), 31  ;;  %1322 = vmatpush3.bf16.msra.mxu1 %v1409_v33 }
  0x16   : > { %s1212_s20 = sshll.u32 %s2096_s15, 3  ;;  %1339 = vmatprep.subr.bf16.mxu1 %v1410_v34  ;;  %s1476_s15 = scalar_lea.vmem %s2013_s14, 2048 }
  0x17   : > { %s1649_s23 = scalar_lea.vmem %s2063_s0, %s1212_s20  ;;  %1292 = vmatpush3.bf16.msra.mxu0 %v1402_v2  ;;  %s1696_s17 = scalar_lea.vmem %s2064_s1, %s1212_s20 }
  0x18   : > { %v303_v4 = vld [vmem:[%s1649_s23] sm:$0xff]  ;;  %v304_v5 = vld [vmem:[%s1649_s23 + $0x8] sm:$0xff]  ;;  %1293 = vmatprep.subr.bf16.mxu0 %v1403_v3  ;;  %v305_v11 = vld [vmem:[%s1649_s23 + $0x10] sm:$0xff]  ;;  %p1477_p11 = scmp.ne.s32.totalorder %s2013_s14, %s1476_s15  ;;  %s1540_s20 = smov [#allocation2]  }
  0x19   : > { %v319_v6 = vpack.c.bf16 %v304_v5, %v303_v4  ;;  %v306_v12 = vld [vmem:[%s1649_s23 + $0x18] sm:$0xff]  ;;  %v307_v13 = vld [vmem:[%s1649_s23 + $0x20] sm:$0xff]  ;;  %v308_v14 = vld [vmem:[%s1649_s23 + $0x28] sm:$0xff]  ;;  %s1480_s18 = sshll.u32 %s1540_s20, 4  ;;  %s1481_s18 = int_to_ptr.vmem [resolvable:$false] %s1480_s18 }
  0x1a   : > { %v320_v15 = vpack.c.bf16 %v306_v12, %v305_v11  ;;  %v321_v16 = vpack.c.bf16 %v308_v14, %v307_v13  ;;  %v309_v17 = vld [vmem:[%s1649_s23 + $0x30] sm:$0xff]  ;;  %v310_v18 = vld [vmem:[%s1649_s23 + $0x38] sm:$0xff]  ;;  %v311_v19 = vld [vmem:[%s1649_s23 + $0x40] sm:$0xff]  ;;  %p1478_p12 = pnand %p1477_p11, %p1621_p5  ;;  %s1482_s19 = scalar_lea.vmem %s1481_s18, 4096 }
  0x1b   : > { %1303 = vmatprep.mubr.bf16.mxu0 %v319_v6  ;;  %1294 = vmatpush3.bf16.msra.mxu0 %v1403_v3  ;;  %v312_v20 = vld [vmem:[%s1649_s23 + $0x48] sm:$0xff]  ;;  %v322_v21 = vpack.c.bf16 %v310_v18, %v309_v17  ;;  %v313_v23 = vld [vmem:[%s1649_s23 + $0x50] sm:$0xff]  ;;  %v314_v24 = vld [vmem:[%s1649_s23 + $0x58] sm:$0xff]  ;;  %p1483_p0 = scmp.lt.s32.totalorder %s2013_s14, %s1481_s18  ;;  %p1484_p1 = scmp.lt.s32.totalorder %s1482_s19, %s1476_s15 }
  0x1c   : > { %1295 = vmatprep.subr.bf16.mxu0 %v1404_v7  ;;  %v323_v22 = vpack.c.bf16 %v312_v20, %v311_v19  ;;  %v315_v25 = vld [vmem:[%s1649_s23 + $0x60] sm:$0xff]  ;;  %v316_v26 = vld [vmem:[%s1649_s23 + $0x68] sm:$0xff]  ;;  %v324_v27 = vpack.c.bf16 %v314_v24, %v313_v23  ;;  %v317_v29 = vld [vmem:[%s1649_s23 + $0x70] sm:$0xff]  ;;  %p1479_p13 = pneg %p1478_p12 }
  0x1d   : > { %v325_v28 = vpack.c.bf16 %v316_v26, %v315_v25  ;;  %v318_v30 = vld [vmem:[%s1649_s23 + $0x78] sm:$0xff]  ;;  %v345_v35 = vld [vmem:[%s1696_s17 + $0x10] sm:$0xff]  ;;  %v343_v36 = vld [vmem:[%s1696_s17] sm:$0xff]  ;;  %p1485_p2 = por %p1484_p1, %p1483_p0 }
  0x1e   : > { %v326_v31 = vpack.c.bf16 %v318_v30, %v317_v29  ;;  %v346_v38 = vld [vmem:[%s1696_s17 + $0x18] sm:$0xff]  ;;  %v344_v41 = vld [vmem:[%s1696_s17 + $0x8] sm:$0xff]  ;;  %v349_v51 = vld [vmem:[%s1696_s17 + $0x30] sm:$0xff] }
  0x1f   : > { %1296 = vmatpush3.bf16.msra.mxu0 %v1404_v7  ;;  %v347_v53 = vld [vmem:[%s1696_s17 + $0x20] sm:$0xff]  ;;  %v350_v55 = vld [vmem:[%s1696_s17 + $0x38] sm:$0xff]  ;;  %v348_v59 = vld [vmem:[%s1696_s17 + $0x28] sm:$0xff]  ;;  %p1486_p3 = pnand %p1485_p2, %p1479_p13 }
  0x20   : > { %1297 = vmatprep.subr.bf16.mxu0 %v1405_v8  ;;  %v353_v6 = vld [vmem:[%s1696_s17 + $0x50] sm:$0xff]  ;;  %v354_v11 = vld [vmem:[%s1696_s17 + $0x58] sm:$0xff]  ;;  %v352_v14 = vld [vmem:[%s1696_s17 + $0x48] sm:$0xff] }
  0x21   : > { %v357_v24 = vld [vmem:[%s1696_s17 + $0x70] sm:$0xff]  ;;  %v355_v26 = vld [vmem:[%s1696_s17 + $0x60] sm:$0xff]  ;;  %v358_v29 = vld [vmem:[%s1696_s17 + $0x78] sm:$0xff] }
  0x22   : > { %v356_v32 = vld [vmem:[%s1696_s17 + $0x68] sm:$0xff] }
  0x23   : > { %1298 = vmatpush3.bf16.msra.mxu0 %v1405_v8  ;;  %v351_v8 = vld [vmem:[%s1696_s17 + $0x40] sm:$0xff]  ;;  %s2011_s17 = scalar_lea.hbm %s2070_s7, %s1250_s13 }
  0x24   : > { %1299 = vmatprep.subr.bf16.mxu0 %v1406_v9 }
  0x27   : > { %1300 = vmatpush3.bf16.msra.mxu0 %v1406_v9 }
  0x28   : > { %1301 = vmatprep.subr.bf16.mxu0 %v1407_v10 }
  0x2b   : > { %1302 = vmatpush3.bf16.msra.mxu0 %v1407_v10 }
  0x2e   : > { %1304 = vmatmul.mubr.bf16.vlgmr.msra.gmra.mrb[0].mxu0 %v320_v15 }
  0x2f   : > { %1307 = vmatprep.mubr.bf16.mxu0 %v321_v16 }
  0x36   : > { %1308 = vmatmul.mubr.bf16.gmra.mrb[4].mxu0 %v322_v21 }
  0x37   : > { %1311 = vmatprep.mubr.bf16.mxu0 %v323_v22 }
  0x3e   : > { %1312 = vmatmul.mubr.bf16.gmra.mrb[8].mxu0 %v324_v27 }
  0x3f   : > { %1315 = vmatprep.mubr.bf16.mxu0 %v325_v28 }
  0x46   : > { %1316 = vmatmul.mubr.bf16.gmra.mrb[12].mxu0 %v326_v31 }
 0x101   : > { %v1305_v37 = vpop.f32.mrb[0].mxu0 }
 0x102   : > { %v450_v39 = vadd.f32 %v1305_v37, %v345_v35  ;;  %v441_v40 = vpop.f32.mrb[1].mxu0 }
 0x103   : > { %v442_v42 = vadd.f32 %v441_v40, %v343_v36  ;;  %v1306_v43 = vpop.f32.mrb[2].mxu0 }
 0x104   : > { %v453_v44 = vadd.f32 %v1306_v43, %v346_v38  ;;  %v444_v45 = vpop.f32.mrb[3].mxu0  ;;  %v506_v47 = vmax.f32 %v450_v39, 0.0 }
 0x105   : > { %v445_v46 = vadd.f32 %v444_v45, %v344_v41  ;;  %v504_v49 = vmax.f32 %v442_v42, 0.0 }
 0x106   : > { %v507_v48 = vmax.f32 %v453_v44, 0.0  ;;  %v1223_v44 = vld [vmem:[%s2067_s4] ss:$0 sm:$0xff] }
 0x107   : > { %v505_v50 = vmax.f32 %v445_v46, 0.0 }
 0x108   : > { %v526_v52 = vpack.c.bf16 %v507_v48, %v506_v47 }
 0x109   : > { %v1309_v54 = vpop.f32.mrb[4].mxu0  ;;  %v525_v56 = vpack.c.bf16 %v505_v50, %v504_v49 }
 0x10a   : > { %v466_v57 = vadd.f32 %v1309_v54, %v349_v51  ;;  %v457_v58 = vpop.f32.mrb[5].mxu0 }
 0x10b   : > { %v458_v61 = vadd.f32 %v457_v58, %v347_v53  ;;  %v1310_v62 = vpop.f32.mrb[6].mxu0  ;;  %1323 = vmatprep.mubr.msk.bf16.mxu1 %vm551_vm0, %v525_v56 }
 0x10c   : > { %v469_v63 = vadd.f32 %v1310_v62, %v350_v55  ;;  %v460_v0 = vpop.f32.mrb[7].mxu0  ;;  %1324 = vmatmul.mubr.msk.bf16.vlgmr.msra.gmra.mrb[0].mxu1 %vm551_vm0, %v526_v52  ;;  %v510_v2 = vmax.f32 %v466_v57, 0.0 }
 0x10d   : > { %v461_v1 = vadd.f32 %v460_v0, %v348_v59  ;;  %1340 = vmatpush3.bf16.msra.mxu1 %v1410_v34  ;;  %v508_v4 = vmax.f32 %v458_v61, 0.0 }
 0x10e   : > { %v511_v3 = vmax.f32 %v469_v63, 0.0  ;;  %1341 = vmatprep.subr.bf16.mxu1 %v1411_v60 }
 0x10f   : > { %v509_v5 = vmax.f32 %v461_v1, 0.0 }
 0x110   : > { %v528_v7 = vpack.c.bf16 %v511_v3, %v510_v2 }
 0x111   : > { %v527_v9 = vpack.c.bf16 %v509_v5, %v508_v4  ;;  %v1313_v10 = vpop.f32.mrb[8].mxu0  ;;  %1342 = vmatpush3.bf16.msra.mxu1 %v1411_v60 }
 0x112   : > { %v482_v12 = vadd.f32 %v1313_v10, %v353_v6  ;;  %v473_v13 = vpop.f32.mrb[9].mxu0 }
 0x113   : > { %v474_v15 = vadd.f32 %v473_v13, %v351_v8  ;;  %v1314_v16 = vpop.f32.mrb[10].mxu0  ;;  %1327 = vmatprep.mubr.msk.bf16.mxu1 %vm551_vm0, %v527_v9 }
 0x114   : > { %v485_v17 = vadd.f32 %v1314_v16, %v354_v11  ;;  %v476_v18 = vpop.f32.mrb[11].mxu0  ;;  %1328 = vmatmul.mubr.msk.bf16.gmra.mrb[4].mxu1 %vm551_vm0, %v528_v7  ;;  %v514_v20 = vmax.f32 %v482_v12, 0.0 }
 0x115   : > { %v477_v19 = vadd.f32 %v476_v18, %v352_v14  ;;  %v512_v22 = vmax.f32 %v474_v15, 0.0 }
 0x116   : > { %v515_v21 = vmax.f32 %v485_v17, 0.0 }
 0x117   : > { %v513_v23 = vmax.f32 %v477_v19, 0.0 }
 0x118   : > { %v530_v25 = vpack.c.bf16 %v515_v21, %v514_v20 }
 0x119   : > { %v529_v27 = vpack.c.bf16 %v513_v23, %v512_v22  ;;  %v1317_v28 = vpop.f32.mrb[12].mxu0 }
 0x11a   : > { %v498_v30 = vadd.f32 %v1317_v28, %v357_v24  ;;  %v489_v31 = vpop.f32.mrb[13].mxu0 }
 0x11b   : > { %v490_v33 = vadd.f32 %v489_v31, %v355_v26  ;;  %v1318_v34 = vpop.f32.mrb[14].mxu0  ;;  %1331 = vmatprep.mubr.msk.bf16.mxu1 %vm551_vm0, %v529_v27 }
 0x11c   : > { %v501_v35 = vadd.f32 %v1318_v34, %v358_v29  ;;  %v492_v36 = vpop.f32.mrb[15].mxu0  ;;  %1332 = vmatmul.mubr.msk.bf16.gmra.mrb[8].mxu1 %vm551_vm0, %v530_v25  ;;  %v518_v38 = vmax.f32 %v498_v30, 0.0 }
 0x11d   : > { %v493_v37 = vadd.f32 %v492_v36, %v356_v32  ;;  %v516_v40 = vmax.f32 %v490_v33, 0.0 }
 0x11e   : > { %v519_v39 = vmax.f32 %v501_v35, 0.0 }
 0x11f   : > { %v517_v41 = vmax.f32 %v493_v37, 0.0  ;;  %v1739_v37 = vld [vmem:[%s2069_s6] ss:$0 sm:$0xff] }
 0x120   : > { %v532_v42 = vpack.c.bf16 %v519_v39, %v518_v38 }
 0x121   : > { %v531_v43 = vpack.c.bf16 %v517_v41, %v516_v40 }
 0x123   : > { %1335 = vmatprep.mubr.msk.bf16.mxu1 %vm551_vm0, %v531_v43 }
 0x124   : > { %1336 = vmatmul.mubr.msk.bf16.gmra.mrb[12].mxu1 %vm551_vm0, %v532_v42 }
 0x1df   : > { %v1325_v45 = vpop.f32.mrb[0].mxu1 }
 0x1e0   : > { %v619_v46 = vadd.f32 %v1325_v45, %v1223_v44  ;;  %v610_v47 = vpop.f32.mrb[1].mxu1 }
 0x1e1   : > { %v611_v48 = vadd.f32 %v1223_v44, %v610_v47  ;;  %v1326_v49 = vpop.f32.mrb[2].mxu1 }
 0x1e2   : > { %v622_v50 = vadd.f32 %v1326_v49, %v1223_v44  ;;  %v613_v51 = vpop.f32.mrb[3].mxu1  ;;  %v675_v53 = vmax.f32 %v619_v46, 0.0 }
 0x1e3   : > { %v614_v52 = vadd.f32 %v1223_v44, %v613_v51  ;;  %v673_v55 = vmax.f32 %v611_v48, 0.0 }
 0x1e4   : > { %v676_v54 = vmax.f32 %v622_v50, 0.0 }
 0x1e5   : > { %v674_v56 = vmax.f32 %v614_v52, 0.0 }
 0x1e6   : > { %v695_v57 = vpack.c.bf16 %v676_v54, %v675_v53 }
 0x1e7   : > { %v694_v58 = vpack.c.bf16 %v674_v56, %v673_v55  ;;  %v1329_v59 = vpop.f32.mrb[4].mxu1 }
 0x1e8   : > { %v635_v60 = vadd.f32 %v1329_v59, %v1223_v44  ;;  %v626_v61 = vpop.f32.mrb[5].mxu1 }
 0x1e9   : > { %v627_v62 = vadd.f32 %v1223_v44, %v626_v61  ;;  %v1330_v63 = vpop.f32.mrb[6].mxu1  ;;  %1343 = vmatprep.mubr.msk.bf16.mxu1 %vm551_vm0, %v694_v58 }
 0x1ea   : > { %v638_v0 = vadd.f32 %v1330_v63, %v1223_v44  ;;  %v629_v1 = vpop.f32.mrb[7].mxu1  ;;  %1344 = vmatmul.mubr.msk.bf16.vlgmr.msra.gmra.mrb[16].mxu1 %vm551_vm0, %v695_v57  ;;  %v679_v3 = vmax.f32 %v635_v60, 0.0 }
 0x1eb   : > { %v630_v2 = vadd.f32 %v1223_v44, %v629_v1  ;;  %v677_v5 = vmax.f32 %v627_v62, 0.0 }
 0x1ec   : > { %v680_v4 = vmax.f32 %v638_v0, 0.0 }
 0x1ed   : > { %v678_v6 = vmax.f32 %v630_v2, 0.0 }
 0x1ee   : > { %v697_v7 = vpack.c.bf16 %v680_v4, %v679_v3 }
 0x1ef   : > { %v696_v8 = vpack.c.bf16 %v678_v6, %v677_v5  ;;  %v1333_v9 = vpop.f32.mrb[8].mxu1  ;;  %v841_v6 = vlaneseq }
 0x1f0   : > { %v651_v10 = vadd.f32 %v1333_v9, %v1223_v44  ;;  %v642_v11 = vpop.f32.mrb[9].mxu1 }
 0x1f1   : > { %v643_v12 = vadd.f32 %v1223_v44, %v642_v11  ;;  %v1334_v13 = vpop.f32.mrb[10].mxu1  ;;  %1347 = vmatprep.mubr.msk.bf16.mxu1 %vm551_vm0, %v696_v8 }
 0x1f2   : > { %v654_v14 = vadd.f32 %v1334_v13, %v1223_v44  ;;  %v645_v15 = vpop.f32.mrb[11].mxu1  ;;  %1348 = vmatmul.mubr.msk.bf16.gmra.mrb[20].mxu1 %vm551_vm0, %v697_v7  ;;  %v683_v17 = vmax.f32 %v651_v10, 0.0 }
 0x1f3   : > { %v646_v16 = vadd.f32 %v1223_v44, %v645_v15  ;;  %v681_v19 = vmax.f32 %v643_v12, 0.0 }
 0x1f4   : > { %v684_v18 = vmax.f32 %v654_v14, 0.0 }
 0x1f5   : > { %v682_v20 = vmax.f32 %v646_v16, 0.0 }
 0x1f6   : > { %v699_v21 = vpack.c.bf16 %v684_v18, %v683_v17  ;;  %v1776_v17 = vand.u32 127, %v841_v6 }
 0x1f7   : > { %v698_v22 = vpack.c.bf16 %v682_v20, %v681_v19  ;;  %v1337_v23 = vpop.f32.mrb[12].mxu1 }
 0x1f8   : > { %v667_v24 = vadd.f32 %v1337_v23, %v1223_v44  ;;  %v658_v25 = vpop.f32.mrb[13].mxu1  ;;  %vm843_vm1 = vcmp.ge.s32.totalorder %v1776_v17, 8  ;;  %vm844_vm2 = vcmp.lt.s32.totalorder %v1776_v17, 16 }
 0x1f9   : > { %v659_v26 = vadd.f32 %v1223_v44, %v658_v25  ;;  %v1338_v27 = vpop.f32.mrb[14].mxu1  ;;  %1351 = vmatprep.mubr.msk.bf16.mxu1 %vm551_vm0, %v698_v22  ;;  %vm1840_vm8 = vmand %vm843_vm1, %vm844_vm2 }
 0x1fa   : > { %v670_v28 = vadd.f32 %v1338_v27, %v1223_v44  ;;  %v661_v29 = vpop.f32.mrb[15].mxu1  ;;  %1352 = vmatmul.mubr.msk.bf16.gmra.mrb[24].mxu1 %vm551_vm0, %v699_v21  ;;  %v687_v31 = vmax.f32 %v667_v24, 0.0 }
 0x1fb   : > { %v662_v30 = vadd.f32 %v1223_v44, %v661_v29  ;;  %v685_v33 = vmax.f32 %v659_v26, 0.0 }
 0x1fc   : > { %v688_v32 = vmax.f32 %v670_v28, 0.0 }
 0x1fd   : > { %v686_v34 = vmax.f32 %v662_v30, 0.0 }
 0x1fe   : > { %v701_v35 = vpack.c.bf16 %v688_v32, %v687_v31 }
 0x1ff   : > { %v700_v36 = vpack.c.bf16 %v686_v34, %v685_v33 }
 0x201   : > { %1355 = vmatprep.mubr.msk.bf16.mxu1 %vm551_vm0, %v700_v36 }
 0x202   : > { %1356 = vmatmul.mubr.msk.bf16.gmra.mrb[28].mxu1 %vm551_vm0, %v701_v35 }
 0x2bd   : > { %v1345_v38 = vpop.f32.mrb[16].mxu1 }
 0x2be   : > { %v1742_v39 = vadd.f32 %v1345_v38, %v1739_v37  ;;  %v778_v40 = vpop.f32.mrb[17].mxu1 }
 0x2bf   : > { %v1745_v41 = vadd.f32 %v1739_v37, %v778_v40  ;;  %v1346_v42 = vpop.f32.mrb[18].mxu1 }
 0x2c0   : > { %v864_v43 = vand.u32 2147483647, %v1742_v39  ;;  %v1749_v44 = vadd.f32 %v1346_v42, %v1739_v37  ;;  %v781_v45 = vpop.f32.mrb[19].mxu1  ;;  %v848_v21 = vmax.f32 %v1742_v39, 0.0 }
 0x2c1   : > { %v862_v46 = vand.u32 2147483647, %v1745_v41  ;;  %v1753_v47 = vadd.f32 %v1739_v37, %v781_v45  ;;  %v846_v22 = vmax.f32 %v1745_v41, 0.0 }
 0x2c2   : > { %v880_v48 = vsub.f32 0.0, %v864_v43  ;;  %v865_v49 = vand.u32 2147483647, %v1749_v44  ;;  %v849_v28 = vmax.f32 %v1749_v44, 0.0 }
 0x2c3   : > { %v878_v50 = vsub.f32 0.0, %v862_v46  ;;  %v863_v51 = vand.u32 2147483647, %v1753_v47  ;;  %v847_v32 = vmax.f32 %v1753_v47, 0.0 }
 0x2c4   : > { %v898_v52 = vmul.f32 1.442695, %v880_v48  ;;  %v881_v53 = vsub.f32 0.0, %v865_v49 }
 0x2c5   : > { %v894_v54 = vmul.f32 1.442695, %v878_v50  ;;  %v879_v55 = vsub.f32 0.0, %v863_v51  ;;  %v1349_v56 = vpop.f32.mrb[20].mxu1 }
 0x2c6   : > { %1412 = vpow2.f32 %v898_v52  ;;  %v900_v57 = vmul.f32 1.442695, %v881_v53  ;;  %v1758_v58 = vadd.f32 %v1349_v56, %v1739_v37  ;;  %v794_v59 = vpop.f32.mrb[21].mxu1 }
 0x2c7   : > { %1414 = vpow2.f32 %v894_v54  ;;  %v896_v60 = vmul.f32 1.442695, %v879_v55  ;;  %v1761_v61 = vadd.f32 %v1739_v37, %v794_v59  ;;  %v1350_v62 = vpop.f32.mrb[22].mxu1 }
 0x2c8   : > { %1416 = vpow2.f32 %v900_v57  ;;  %v868_v63 = vand.u32 2147483647, %v1758_v58  ;;  %v1765_v0 = vadd.f32 %v1350_v62, %v1739_v37  ;;  %v797_v1 = vpop.f32.mrb[23].mxu1  ;;  %v852_v33 = vmax.f32 %v1758_v58, 0.0 }
 0x2c9   : > { %1418 = vpow2.f32 %v896_v60  ;;  %v866_v2 = vand.u32 2147483647, %v1761_v61  ;;  %v1769_v3 = vadd.f32 %v1739_v37, %v797_v1  ;;  %v850_v48 = vmax.f32 %v1761_v61, 0.0 }
 0x2ca   : > { %v884_v4 = vsub.f32 0.0, %v868_v63  ;;  %v869_v5 = vand.u32 2147483647, %v1765_v0  ;;  %v853_v51 = vmax.f32 %v1765_v0, 0.0 }
 0x2cb   : > { %v882_v7 = vsub.f32 0.0, %v866_v2  ;;  %v867_v8 = vand.u32 2147483647, %v1769_v3  ;;  %v851_v52 = vmax.f32 %v1769_v3, 0.0 }
 0x2cc   : > { %v906_v9 = vmul.f32 1.442695, %v884_v4  ;;  %v885_v10 = vsub.f32 0.0, %v869_v5 }
 0x2cd   : > { %v902_v11 = vmul.f32 1.442695, %v882_v7  ;;  %v883_v12 = vsub.f32 0.0, %v867_v8  ;;  %v1353_v13 = vpop.f32.mrb[24].mxu1 }
 0x2ce   : > { %1420 = vpow2.f32 %v906_v9  ;;  %v908_v14 = vmul.f32 1.442695, %v885_v10  ;;  %v1774_v15 = vadd.f32 %v1353_v13, %v1739_v37  ;;  %v810_v16 = vpop.f32.mrb[25].mxu1 }
 0x2cf   : > { %1422 = vpow2.f32 %v902_v11  ;;  %v904_v18 = vmul.f32 1.442695, %v883_v12  ;;  %v1354_v19 = vpop.f32.mrb[26].mxu1  ;;  %v1794_v53 = vadd.f32 %v1739_v37, %v810_v16 }
 0x2d0   : > { %v1413_v20 = vpop.eup %1412  ;;  %1424 = vpow2.f32 %v908_v14  ;;  %v872_v23 = vand.u32 2147483647, %v1774_v15  ;;  %v1781_v24 = vpop.f32.mrb[27].mxu1  ;;  %v1803_v57 = vadd.f32 %v1354_v19, %v1739_v37 }
 0x2d1   : > { %v1415_v25 = vpop.eup %1414  ;;  %v944_v26 = vadd.f32 1.0, %v1413_v20  ;;  %v947_v27 = vmul.f32 -0.5, %v1413_v20  ;;  %1426 = vpow2.f32 %v904_v18  ;;  %v950_v35 = vand.u32 2147483647, %v1413_v20 }
 0x2d2   : > { %v1417_v29 = vpop.eup %1416  ;;  %v926_v30 = vadd.f32 1.0, %v1415_v25  ;;  %v929_v31 = vmul.f32 -0.5, %v1415_v25  ;;  %v888_v38 = vsub.f32 0.0, %v872_v23  ;;  %v932_v42 = vand.u32 2147483647, %v1415_v25 }
 0x2d3   : > { %v1419_v34 = vpop.eup %1418  ;;  %1428 = vlog2.f32 %v944_v26  ;;  %v953_v36 = vadd.f32 1.0, %v1417_v29  ;;  %v948_v40 = vadd.f32 1.0, %v947_v27  ;;  %v956_v43 = vmul.f32 -0.5, %v1417_v29 }
 0x2d4   : > { %1430 = vlog2.f32 %v926_v30  ;;  %v930_v45 = vadd.f32 1.0, %v929_v31  ;;  %v935_v46 = vadd.f32 1.0, %v1419_v34  ;;  %v938_v50 = vmul.f32 -0.5, %v1419_v34 }
 0x2d5   : > { %1432 = vlog2.f32 %v953_v36  ;;  %v1789_v49 = vpop.f32.mrb[28].mxu1  ;;  %vm1798_vm3 = vcmp.lt.f32.partialorder %v950_v35, 0.0004427343  ;;  %v914_v56 = vmul.f32 1.442695, %v888_v38  ;;  %v949_v62 = vmul.f32 %v1413_v20, %v948_v40 }
 0x2d6   : > { %v1796_v54 = vpop.f32.mrb[29].mxu1  ;;  %1434 = vlog2.f32 %v935_v46  ;;  %vm1807_vm4 = vcmp.lt.f32.partialorder %v932_v42, 0.0004427343  ;;  %v957_v1 = vadd.f32 1.0, %v956_v43  ;;  %v959_v2 = vand.u32 2147483647, %v1417_v29 }
 0x2d7   : > { %v1805_v59 = vpop.f32.mrb[30].mxu1  ;;  %v931_v6 = vmul.f32 %v1415_v25, %v930_v45  ;;  %1436 = vpow2.f32 %v914_v56  ;;  %v939_v10 = vadd.f32 1.0, %v938_v50  ;;  %v941_v11 = vand.u32 2147483647, %v1419_v34 }
 0x2d8   : > { %v1421_v60 = vpop.eup %1420  ;;  %v1811_v4 = vpop.f32.mrb[31].mxu1  ;;  %v958_v20 = vmul.f32 %v1417_v29, %v957_v1  ;;  %vm1819_vm5 = vcmp.lt.f32.partialorder %v959_v2, 0.0004427343  ;;  %v870_v31 = vand.u32 2147483647, %v1794_v53 }
 0x2d9   : > { %v1423_v5 = vpop.eup %1422  ;;  %v980_v7 = vadd.f32 1.0, %v1421_v60  ;;  %v983_v8 = vmul.f32 -0.5, %v1421_v60  ;;  %v986_v18 = vand.u32 2147483647, %v1421_v60  ;;  %v940_v38 = vmul.f32 %v1419_v34, %v939_v10 }
 0x2da   : > { %v1813_v9 = vpop.eup %1424  ;;  %v962_v12 = vadd.f32 1.0, %v1423_v5  ;;  %v965_v13 = vmul.f32 -0.5, %v1423_v5  ;;  %v968_v25 = vand.u32 2147483647, %v1423_v5  ;;  %vm1827_vm6 = vcmp.lt.f32.partialorder %v941_v11, 0.0004427343 }
 0x2db   : > { %v1815_v14 = vpop.eup %1426  ;;  %1438 = vlog2.f32 %v980_v7  ;;  %v984_v16 = vadd.f32 1.0, %v983_v8  ;;  %v989_v19 = vadd.f32 1.0, %v1813_v9  ;;  %v992_v40 = vmul.f32 -0.5, %v1813_v9 }
 0x2dc   : > { %1440 = vlog2.f32 %v962_v12  ;;  %v966_v27 = vadd.f32 1.0, %v965_v13  ;;  %v971_v30 = vadd.f32 1.0, %v1815_v14  ;;  %vm1832_vm7 = vcmp.lt.f32.partialorder %v986_v18, 0.0004427343 }
 0x2dd   : > { %v1429_v26 = vpop.eup %1428  ;;  %1442 = vlog2.f32 %v989_v19  ;;  %v985_v45 = vmul.f32 %v1421_v60, %v984_v16  ;;  %vm1846_vm9 = vcmp.lt.f32.partialorder %v968_v25, 0.0004427343  ;;  %v995_v60 = vand.u32 2147483647, %v1813_v9 }
 0x2de   : > { %v1431_v35 = vpop.eup %1430  ;;  %v946_v36 = vmul.f32 0.6931472, %v1429_v26  ;;  %1444 = vlog2.f32 %v971_v30  ;;  %v974_v2 = vmul.f32 -0.5, %v1815_v14  ;;  %v967_v10 = vmul.f32 %v1423_v5, %v966_v27 }
 0x2df   : > { %v1433_v42 = vpop.eup %1432  ;;  %v928_v43 = vmul.f32 0.6931472, %v1431_v35  ;;  %v886_v11 = vsub.f32 0.0, %v870_v31  ;;  %v993_v13 = vadd.f32 1.0, %v992_v40  ;;  %v977_v63 = vand.u32 2147483647, %v1815_v14 }
 0x2e0   : > { %v952_v50 = vsel %vm1798_vm3, %v949_v62, %v946_v36  ;;  %v955_v56 = vmul.f32 0.6931472, %v1433_v42  ;;  %v1435_v7 = vpop.eup %1434  ;;  %vm1883_vm10 = vcmp.lt.f32.partialorder %v995_v60, 0.0004427343  ;;  %v873_v30 = vand.u32 2147483647, %v1803_v57 }
 0x2e1   : > { %v1072_v17 = vadd.f32 %v952_v50, %v848_v21  ;;  %v934_v8 = vsel %vm1807_vm4, %v931_v6, %v928_v43  ;;  %v937_v12 = vmul.f32 0.6931472, %v1435_v7  ;;  %v1860_v16 = vpop.eup %1436  ;;  %v910_v5 = vmul.f32 1.442695, %v886_v11 }
 0x2e2   : > { %v1070_v55 = vadd.f32 %v934_v8, %v846_v22  ;;  %v961_v62 = vsel %vm1819_vm5, %v958_v20, %v955_v56  ;;  %v1016_v19 = vadd.f32 1.0, %v1860_v16  ;;  %v994_v27 = vmul.f32 %v1813_v9, %v993_v13 }
 0x2e3   : > { %v1088_v18 = vsel %vm1840_vm8, %v1072_v17, %v1742_v39  ;;  %v1073_v21 = vadd.f32 %v961_v62, %v849_v28  ;;  %v943_v6 = vsel %vm1827_vm6, %v940_v38, %v937_v12  ;;  %v975_v39 = vadd.f32 1.0, %v974_v2 }
 0x2e4   : > { %1104 = vst [vmem:[%s1868_s9 + $0x10] sm:$0xff] %v1088_v18  ;;  %v1086_v22 = vsel %vm1840_vm8, %v1070_v55, %v1745_v41  ;;  %v1071_v23 = vadd.f32 %v943_v6, %v847_v32  ;;  %1446 = vpow2.f32 %v910_v5  ;;  %vm1893_vm11 = vcmp.lt.f32.partialorder %v977_v63, 0.0004427343 }
 0x2e5   : > { %v1439_v28 = vpop.eup %1438  ;;  %1102 = vst [vmem:[%s1868_s9] sm:$0xff] %v1086_v22  ;;  %v1089_v20 = vsel %vm1840_vm8, %v1073_v21, %v1749_v44  ;;  %1448 = vlog2.f32 %v1016_v19  ;;  %v1899_v36 = vadd.f32 %v1739_v37, %v1781_v24  ;;  %v976_v29 = vmul.f32 %v1815_v14, %v975_v39 }
 0x2e6   : > { %v1441_v41 = vpop.eup %1440  ;;  %1105 = vst [vmem:[%s1868_s9 + $0x18] sm:$0xff] %v1089_v20  ;;  %v982_v26 = vmul.f32 0.6931472, %v1439_v28  ;;  %v1087_v44 = vsel %vm1840_vm8, %v1071_v23, %v1753_v47  ;;  %v889_v40 = vsub.f32 0.0, %v873_v30  ;;  %v1019_v24 = vmul.f32 -0.5, %v1860_v16 }
 0x2e7   : > { %v1443_v31 = vpop.eup %1442  ;;  %v964_v35 = vmul.f32 0.6931472, %v1441_v41  ;;  %1103 = vst [vmem:[%s1868_s9 + $0x8] sm:$0xff] %v1087_v44  ;;  %v871_v50 = vand.u32 2147483647, %v1899_v36  ;;  %v1922_v2 = vadd.f32 %v1789_v49, %v1739_v37  ;;  %v1954_v13 = vadd.f32 %v1739_v37, %v1811_v4 }
 0x2e8   : > { %v988_v9 = vsel %vm1832_vm7, %v985_v45, %v982_v26  ;;  %v991_v38 = vmul.f32 0.6931472, %v1443_v31  ;;  %v1445_v42 = vpop.eup %1444  ;;  %v916_v56 = vmul.f32 1.442695, %v889_v40  ;;  %v1020_v17 = vadd.f32 1.0, %v1019_v24 }
 0x2e9   : > { %v1076_v47 = vadd.f32 %v988_v9, %v852_v33  ;;  %v970_v43 = vsel %vm1846_vm9, %v967_v10, %v964_v35  ;;  %v973_v14 = vmul.f32 0.6931472, %v1445_v42  ;;  %v887_v60 = vsub.f32 0.0, %v871_v50 }
 0x2ea   : > { %v1074_v45 = vadd.f32 %v970_v43, %v850_v48  ;;  %v997_v46 = vsel %vm1883_vm10, %v994_v27, %v991_v38  ;;  %1450 = vpow2.f32 %v916_v56  ;;  %v876_v10 = vand.u32 2147483647, %v1922_v2 }
 0x2eb   : > { %v1092_v33 = vsel %vm1840_vm8, %v1076_v47, %v1758_v58  ;;  %v1077_v1 = vadd.f32 %v997_v46, %v853_v51  ;;  %v979_v7 = vsel %vm1893_vm11, %v976_v29, %v973_v14  ;;  %v1932_v58 = vadd.f32 %v1739_v37, %v1796_v54 }
 0x2ec   : > { %1108 = vst [vmem:[%s1868_s9 + $0x30] sm:$0xff] %v1092_v33  ;;  %v1090_v48 = vsel %vm1840_vm8, %v1074_v45, %v1761_v61  ;;  %v1075_v51 = vadd.f32 %v979_v7, %v851_v52  ;;  %v912_v8 = vmul.f32 1.442695, %v887_v60  ;;  %v1022_v61 = vand.u32 2147483647, %v1860_v16 }
 0x2ed   : > { %1106 = vst [vmem:[%s1868_s9 + $0x20] sm:$0xff] %v1090_v48  ;;  %v1093_v49 = vsel %vm1840_vm8, %v1077_v1, %v1765_v0  ;;  %v874_v11 = vand.u32 2147483647, %v1932_v58  ;;  %v1946_v54 = vadd.f32 %v1805_v59, %v1739_v37  ;;  %v892_v12 = vsub.f32 0.0, %v876_v10 }
 0x2ee   : > { %1109 = vst [vmem:[%s1868_s9 + $0x38] sm:$0xff] %v1093_v49  ;;  %v1447_v55 = vpop.eup %1446  ;;  %v1091_v0 = vsel %vm1840_vm8, %v1075_v51, %v1769_v3  ;;  %1452 = vpow2.f32 %v912_v8  ;;  %v1021_v21 = vmul.f32 %v1860_v16, %v1020_v17  ;;  %v856_v5 = vmax.f32 %v1774_v15, 0.0 }
 0x2ef   : > { %v1449_v52 = vpop.eup %1448  ;;  %1107 = vst [vmem:[%s1868_s9 + $0x28] sm:$0xff] %v1091_v0  ;;  %v998_v62 = vadd.f32 1.0, %v1447_v55  ;;  %v890_v63 = vsub.f32 0.0, %v874_v11  ;;  %v877_v59 = vand.u32 2147483647, %v1946_v54  ;;  %v1001_v4 = vmul.f32 -0.5, %v1447_v55 }
 0x2f0   : > { %v1018_v18 = vmul.f32 0.6931472, %v1449_v52  ;;  %vm1023_vm12 = vcmp.lt.f32.partialorder %v1022_v61, 0.0004427343  ;;  %v922_v3 = vmul.f32 1.442695, %v892_v12 }
 0x2f1   : > { %1454 = vlog2.f32 %v998_v62  ;;  %v918_v6 = vmul.f32 1.442695, %v890_v63  ;;  %v893_v39 = vsub.f32 0.0, %v877_v59  ;;  %v875_v37 = vand.u32 2147483647, %v1954_v13 }
 0x2f2   : > { %v1024_v22 = vsel %vm1023_vm12, %v1021_v21, %v1018_v18  ;;  %1456 = vpow2.f32 %v922_v3  ;;  %v1002_v27 = vadd.f32 1.0, %v1001_v4  ;;  %v1004_v30 = vand.u32 2147483647, %v1447_v55 }
 0x2f3   : > { %v1080_v19 = vadd.f32 %v1024_v22, %v856_v5  ;;  %1458 = vpow2.f32 %v918_v6  ;;  %v924_v28 = vmul.f32 1.442695, %v893_v39  ;;  %v891_v23 = vsub.f32 0.0, %v875_v37 }
 0x2f4   : > { %v1451_v16 = vpop.eup %1450  ;;  %v1003_v9 = vmul.f32 %v1447_v55, %v1002_v27  ;;  %vm1005_vm13 = vcmp.lt.f32.partialorder %v1004_v30, 0.0004427343  ;;  %v857_v33 = vmax.f32 %v1803_v57, 0.0  ;;  %v855_v52 = vmax.f32 %v1899_v36, 0.0 }
 0x2f5   : > { %v1096_v20 = vsel %vm1840_vm8, %v1080_v19, %v1774_v15  ;;  %v1025_v25 = vadd.f32 1.0, %v1451_v16  ;;  %1460 = vpow2.f32 %v924_v28  ;;  %v920_v41 = vmul.f32 1.442695, %v891_v23 }
 0x2f6   : > { %1112 = vst [vmem:[%s1868_s9 + $0x50] sm:$0xff] %v1096_v20  ;;  %v1028_v35 = vmul.f32 -0.5, %v1451_v16  ;;  %v854_v15 = vmax.f32 %v1794_v53, 0.0  ;;  %v1031_v46 = vand.u32 2147483647, %v1451_v16  ;;  %v860_v39 = vmax.f32 %v1922_v2, 0.0 }
 0x2f7   : > { %1462 = vlog2.f32 %v1025_v25 }
 0x2f8   : > { %v1453_v26 = vpop.eup %1452  ;;  %1464 = vpow2.f32 %v920_v41  ;;  %v1029_v24 = vadd.f32 1.0, %v1028_v35  ;;  %vm1032_vm14 = vcmp.lt.f32.partialorder %v1031_v46, 0.0004427343  ;;  %v858_v41 = vmax.f32 %v1932_v58, 0.0 }
 0x2f9   : > { %v1007_v31 = vadd.f32 1.0, %v1453_v26  ;;  %v1010_v42 = vmul.f32 -0.5, %v1453_v26  ;;  %v1013_v51 = vand.u32 2147483647, %v1453_v26 }
 0x2fa   : > { %v1030_v49 = vmul.f32 %v1451_v16, %v1029_v24 }
 0x2fb   : > { %v1455_v44 = vpop.eup %1454  ;;  %1466 = vlog2.f32 %v1007_v31  ;;  %v1011_v1 = vadd.f32 1.0, %v1010_v42  ;;  %vm1014_vm15 = vcmp.lt.f32.partialorder %v1013_v51, 0.0004427343 }
 0x2fc   : > { %v1000_v32 = vmul.f32 0.6931472, %v1455_v44  ;;  %v1457_v38 = vpop.eup %1456 }
 0x2fd   : > { %v1459_v29 = vpop.eup %1458  ;;  %v1052_v47 = vadd.f32 1.0, %v1457_v38  ;;  %v1055_v17 = vmul.f32 -0.5, %v1457_v38  ;;  %v1012_v0 = vmul.f32 %v1453_v26, %v1011_v1  ;;  %v1058_v63 = vand.u32 2147483647, %v1457_v38 }
 0x2fe   : > { %v1006_v40 = vsel %vm1005_vm13, %v1003_v9, %v1000_v32  ;;  %v1034_v50 = vadd.f32 1.0, %v1459_v29  ;;  %v1037_v8 = vmul.f32 -0.5, %v1459_v29  ;;  %v1040_v3 = vand.u32 2147483647, %v1459_v29 }
 0x2ff   : > { %v1078_v43 = vadd.f32 %v1006_v40, %v854_v15  ;;  %v1965_v45 = vpop.eup %1460  ;;  %1468 = vlog2.f32 %v1052_v47  ;;  %v1056_v62 = vadd.f32 1.0, %v1055_v17  ;;  %vm1059_vm0 = vcmp.lt.f32.partialorder %v1058_v63, 0.0004427343 }
 0x300   : > { %1470 = vlog2.f32 %v1034_v50  ;;  %v1061_v60 = vadd.f32 1.0, %v1965_v45  ;;  %v1064_v12 = vmul.f32 -0.5, %v1965_v45  ;;  %v1038_v59 = vadd.f32 1.0, %v1037_v8 }
 0x301   : > { %v1094_v14 = vsel %vm1840_vm8, %v1078_v43, %v1794_v53  ;;  %v1463_v56 = vpop.eup %1462  ;;  %v1057_v28 = vmul.f32 %v1457_v38, %v1056_v62  ;;  %v1067_v23 = vand.u32 2147483647, %v1965_v45  ;;  %vm1041_vm1 = vcmp.lt.f32.partialorder %v1040_v3, 0.0004427343 }
 0x302   : > { %1110 = vst [vmem:[%s1868_s9 + $0x40] sm:$0xff] %v1094_v14  ;;  %v1973_v48 = vpop.eup %1464  ;;  %v1027_v7 = vmul.f32 0.6931472, %v1463_v56  ;;  %1472 = vlog2.f32 %v1061_v60  ;;  %v1065_v16 = vadd.f32 1.0, %v1064_v12  ;;  %v1039_v20 = vmul.f32 %v1459_v29, %v1038_v59 }
 0x303   : > { %v1043_v53 = vadd.f32 1.0, %v1973_v48  ;;  %v1046_v22 = vmul.f32 -0.5, %v1973_v48  ;;  %v1049_v31 = vand.u32 2147483647, %v1973_v48  ;;  %v861_v15 = vmax.f32 %v1946_v54, 0.0 }
 0x304   : > { %v1033_v10 = vsel %vm1032_vm14, %v1030_v49, %v1027_v7  ;;  %v1066_v32 = vmul.f32 %v1965_v45, %v1065_v16  ;;  %vm1068_vm2 = vcmp.lt.f32.partialorder %v1067_v23, 0.0004427343  ;;  %v859_v43 = vmax.f32 %v1954_v13, 0.0 }
 0x305   : > { %v1467_v61 = vpop.eup %1466  ;;  %v1081_v11 = vadd.f32 %v1033_v10, %v857_v33  ;;  %1474 = vlog2.f32 %v1043_v53  ;;  %v1047_v26 = vadd.f32 1.0, %v1046_v22  ;;  %vm1050_vm3 = vcmp.lt.f32.partialorder %v1049_v31, 0.0004427343 }
 0x306   : > { %v1009_v55 = vmul.f32 0.6931472, %v1467_v61 }
 0x307   : > { %v1097_v18 = vsel %vm1840_vm8, %v1081_v11, %v1803_v57  ;;  %v1048_v47 = vmul.f32 %v1973_v48, %v1047_v26 }
 0x308   : > { %v1015_v21 = vsel %vm1014_vm15, %v1012_v0, %v1009_v55  ;;  %1113 = vst [vmem:[%s1868_s9 + $0x58] sm:$0xff] %v1097_v18 }
 0x309   : > { %v1079_v5 = vadd.f32 %v1015_v21, %v855_v52  ;;  %v1469_v6 = vpop.eup %1468 }
 0x30a   : > { %v1471_v19 = vpop.eup %1470  ;;  %v1054_v4 = vmul.f32 0.6931472, %v1469_v6 }
 0x30b   : > { %v1095_v37 = vsel %vm1840_vm8, %v1079_v5, %v1899_v36  ;;  %v1036_v57 = vmul.f32 0.6931472, %v1471_v19 }
 0x30c   : > { %1111 = vst [vmem:[%s1868_s9 + $0x48] sm:$0xff] %v1095_v37  ;;  %v1060_v25 = vsel %vm1059_vm0, %v1057_v28, %v1054_v4  ;;  %v1473_v27 = vpop.eup %1472 }
 0x30d   : > { %v1084_v30 = vadd.f32 %v1060_v25, %v860_v39  ;;  %v1042_v36 = vsel %vm1041_vm1, %v1039_v20, %v1036_v57  ;;  %v1063_v35 = vmul.f32 0.6931472, %v1473_v27 }
 0x30e   : > { %v1082_v44 = vadd.f32 %v1042_v36, %v858_v41 }
 0x30f   : > { %v1475_v9 = vpop.eup %1474  ;;  %v1100_v38 = vsel %vm1840_vm8, %v1084_v30, %v1922_v2  ;;  %v1069_v40 = vsel %vm1068_vm2, %v1066_v32, %v1063_v35 }
 0x310   : > { %1116 = vst [vmem:[%s1868_s9 + $0x70] sm:$0xff] %v1100_v38  ;;  %v1098_v29 = vsel %vm1840_vm8, %v1082_v44, %v1932_v58  ;;  %v1045_v42 = vmul.f32 0.6931472, %v1475_v9  ;;  %v1085_v2 = vadd.f32 %v1069_v40, %v861_v15 }
 0x311   : > { %1114 = vst [vmem:[%s1868_s9 + $0x60] sm:$0xff] %v1098_v29 }
 0x312   : > { %v1051_v24 = vsel %vm1050_vm3, %v1048_v47, %v1045_v42  ;;  %v1101_v50 = vsel %vm1840_vm8, %v1085_v2, %v1946_v54 }
 0x313   : > { %v1083_v58 = vadd.f32 %v1051_v24, %v859_v43  ;;  %1117 = vst [vmem:[%s1868_s9 + $0x78] sm:$0xff] %v1101_v50 }
 0x315   : > { %v1099_v45 = vsel %vm1840_vm8, %v1083_v58, %v1954_v13 }
 0x316   : > { %1115 = vst [vmem:[%s1868_s9 + $0x68] sm:$0xff] %v1099_v45 }
 0x317   : > { %1489 = shalt.err (!%p1486_p3)
}
 0x318   : > { %s1490_s21 = scalar_lea.hbm %s2011_s17, 2048  ;;  %s1494_s8 = scalar_lea.hbm %s2070_s7, 4096 }
 0x319   : > { %p1491_p4 = scmp.ne.s32.totalorder %s2011_s17, %s1490_s21  ;;  %p1495_p9 = scmp.lt.u32.totalorder %s2011_s17, %s2070_s7 }
 0x31a   : > { %p1496_p10 = scmp.lt.u32.totalorder %s1494_s8, %s1490_s21  ;;  %p1498_p12 = scmp.lt.u32.totalorder %s1490_s21, %s2011_s17 }
 0x31b   : > { %p1492_p7 = pnand %p1491_p4, %p1621_p5 }
 0x31c   : > { %p1497_p11 = por %p1496_p10, %p1495_p9 }
 0x31d   : > { %p1493_p8 = pneg %p1492_p7 }
 0x31e   : > { %p1499_p13 = por %p1498_p12, %p1497_p11 }
 0x320   : > { %p1500_p0 = pnand %p1499_p13, %p1493_p8 }
 0x322   : > { %1503 = shalt.err (!%p1500_p0)
}
 0x323   : > { %s1541_s23 = smov 128   ;;  %s1542_s16 = smov 8  }
 0x324   : > { %1359 = dma.vmem_to_hbm [thread:$0]  (%p1621_p5), %s2013_s14, 2048, %s2011_s17, %s2022_s28, %s1541_s23, %s1541_s23, %s1542_s16  }
 0x325 PF: > { %p1365_p1 = scmp.ge.s32.totalorder %s1538_s27, 2  ;;  %s1147_s15 = sand.u32 1, %s1526_s24  }
 0x326   : > { %s1148_s20 = scalar_lea.sflag [#allocation3], %s1147_s15 }
 0x327   : > { %p1362_p2 = pnand %p1365_p1, %p1625_p6 }
 0x329   : > { %1521 = dma.done.wait (!%p1362_p2), %s1148_s20, 2048  }
 0x32a   : > { %1523 = vsyncadd (!%p1362_p2), %s1148_s20, 4294965248  ;;  %p17_p3 = scmp.ge.s32.totalorder %s1608_s30, 4   ;;  %s2091_s24 = smov %s1530_s25 }
 0x32b   : > { %s2092_s25 = smov %s1534_s26  ;;  %s2093_s26 = smov %s1619_s10 }
 0x32c   : > { %s2094_s27 = smov %s1608_s30  ;;  %19 = sbr.rel (!%p17_p3) target bundleno = 3 (0x3), region = 86 }
 0x333   :  { %1153 = vsyncpa [#allocation3], 1 }
 0x334   :  { %1155 = vsyncpa [#allocation3 + $0x1], 1 }

</bundles_post_ra>
